<compile_context>
chip_gen: v7x
topology: tpu7x:2x2x1
jax: 0.10.0
libtpu: 0.0.40
codegen_flags: <defaults>
</compile_context>

<pallas_src>
import jax
import jax.numpy as jnp
from jax.experimental import pallas as pl
from jax.experimental.pallas import tpu as pltpu

_NEG_MASK = -1.0e9   # matches PyTorch masked_fill(mask == 0, -1e9)
_NEG_HEAD = -2.0e9   # off-head blocks of the fused score matrix (strictly lower)


# --------------------------------------------------------------------------
# Kernel
# --------------------------------------------------------------------------
def _make_attn_kernel(n_head, q_len, q_dim):
    NL = n_head * q_len

    def kernel(q_ref, k_ref, v_ref, bias_ref, out_ref, *maybe_attn_ref):
        # One grid step = B_TILE batch elements, all heads fused.
        q = q_ref[...]        # (BT, NL, D) bf16, pre-scaled by 1/temperature
        k = k_ref[...]        # (BT, NL, D) bf16
        v = v_ref[...]        # (BT, NL, D) bf16
        bias = bias_ref[...]  # (BT, NL, NL) f32 additive mask (0 / -1e9 / -2e9)

        # Fused QK^T: one (NL, D) x (D, NL) MXU pass per batch element,
        # bf16 operands with f32 accumulation.
        scores = jnp.einsum("bmd,bnd->bmn", q, k,
                            preferred_element_type=jnp.float32)   # (BT, NL, NL)
        scores = scores + bias

        # Numerically-stable softmax in f32.  Off-head entries carry -2e9 and
        # underflow to exactly 0 after exp, so each row is its own head's
        # softmax.  Exact division: attn rows sum to 1 (attn is returned as
        # probabilities; pl.reciprocal(approx=True) would be free on the EUP
        # but loses ~1e-3 of parity).
        row_max = jnp.max(scores, axis=-1, keepdims=True)
        e = jnp.exp(scores - row_max)
        denom = jnp.sum(e, axis=-1, keepdims=True)
        attn = e / denom                                          # (BT, NL, NL)

        # PV matmul: bf16 operands, f32 accumulation.
        out = jnp.einsum("bmn,bnd->bmd", attn.astype(jnp.bfloat16), v,
                         preferred_element_type=jnp.float32)      # (BT, NL, D)

        bt = out.shape[0]
        # Lane-dense store: flatten to (BT, NL*D) (multiple of 128 lanes).
        out_ref[...] = out.reshape(bt, NL * q_dim).astype(out_ref.dtype)

        if maybe_attn_ref:
            # Per-head probabilities live on the block diagonal of the fused
            # attention matrix; extract and store as a flat lane-dense slab.
            blocks = [attn[:, h * q_len:(h + 1) * q_len,
                              h * q_len:(h + 1) * q_len]
                      for h in range(n_head)]                     # nh x (BT, L, L)
            attn_heads = jnp.concatenate(blocks, axis=1)          # (BT, nh*L, L)
            maybe_attn_ref[0][...] = attn_heads.reshape(
                bt, n_head * q_len * q_len).astype(maybe_attn_ref[0].dtype)

    return kernel


# --------------------------------------------------------------------------
# Wrapper
# --------------------------------------------------------------------------
def _choose_b_tile(bs, per_batch_bytes, target_bytes=256 * 1024):
    """Batch-tile size: big enough to amortize the ~0.35us/step overhead
    (aim for ~256KB blocks) but keep >=2 grid steps for v7x's two TensorCores
    whenever that leaves blocks >= ~64KB."""
    bt = max(1, min(bs, target_bytes // max(per_batch_bytes, 1)))
    if bt >= bs and bs >= 2 and (bs // 2) * per_batch_bytes >= 64 * 1024:
        bt = bs // 2
    if bt < bs:
        # Multiple blocks along batch: keep the second-minor dim of the
        # flattened (bs, feature) outputs sublane-aligned.
        bt = max(8, (bt // 8) * 8)
        bt = min(bt, bs)
    return bt


def _attention_pallas(q, k, v, bias, *, n_head, q_len, out_dtype,
                      return_attn=True, attn_dtype=jnp.float32):
    """q, k, v: (bs, nh*L, D) bf16; bias: (bs, nh*L, nh*L) f32 additive mask."""
    bs, NL, D = q.shape
    L = q_len
    assert NL == n_head * L

    per_batch = (3 * NL * D * q.dtype.itemsize
                 + NL * NL * bias.dtype.itemsize
                 + NL * D * jnp.dtype(out_dtype).itemsize)
    if return_attn:
        per_batch += n_head * L * L * jnp.dtype(attn_dtype).itemsize

    bt = _choose_b_tile(bs, per_batch)
    n_tiles = pl.cdiv(bs, bt)
    pad = n_tiles * bt - bs
    if pad:
        padb = lambda x: jnp.pad(x, ((0, pad),) + ((0, 0),) * (x.ndim - 1))
        q, k, v, bias = padb(q), padb(k), padb(v), padb(bias)
    pbs = bs + pad

    out_shapes = (jax.ShapeDtypeStruct((pbs, NL * D), out_dtype),)
    out_specs = (pl.BlockSpec((bt, NL * D), lambda b: (b, 0)),)
    if return_attn:
        out_shapes += (jax.ShapeDtypeStruct((pbs, n_head * L * L), attn_dtype),)
        out_specs += (pl.BlockSpec((bt, n_head * L * L), lambda b: (b, 0)),)

    result = pl.pallas_call(
        _make_attn_kernel(n_head, L, D),
        out_shape=out_shapes,
        grid_spec=pltpu.PrefetchScalarGridSpec(
            num_scalar_prefetch=0,
            grid=(n_tiles,),
            in_specs=[
                pl.BlockSpec((bt, NL, D), lambda b: (b, 0, 0)),    # q
                pl.BlockSpec((bt, NL, D), lambda b: (b, 0, 0)),    # k
                pl.BlockSpec((bt, NL, D), lambda b: (b, 0, 0)),    # v
                pl.BlockSpec((bt, NL, NL), lambda b: (b, 0, 0)),   # additive bias
            ],
            out_specs=out_specs,
        ),
        compiler_params=pltpu.CompilerParams(
            dimension_semantics=("parallel",)),
    )(q, k, v, bias)

    out = result[0][:bs].reshape(bs, n_head, L, D)
    if return_attn:
        attn = result[1][:bs].reshape(bs, n_head, L, L)
        return out, attn
    return out, None


def scaled_dot_product_attention(q, k, v, mask=None, g=None, *,
                                 hidden_size, n_head, gating=False,
                                 params=None, return_attn=True,
                                 attn_dtype=jnp.float32):
    """JAX/Pallas equivalent of ScaledDotProductAttention.forward (eval mode)."""
    bs, nh, q_len, q_dim = q.shape
    temperature = float(hidden_size) ** 0.5
    inv_temp = 1.0 / temperature
    out_dtype = q.dtype

    if gating:
        # Gating glue in plain JAX; 1/temperature is folded into the q scale.
        g_avg = jnp.mean(g, axis=1)                                        # (bs, hidden)
        gate_values = g_avg @ params["gating_w"].T + params["gating_b"]    # (bs, nh*hidden)
        scale = 1.0 + jax.nn.sigmoid(gate_values + params["gating_bias"])  # (bs, nh*hidden)
        # PyTorch applies the scale on (bs, L, nh*hidden) with feature = h*D + d,
        # equivalent to a per-(head, dim) scale on (bs, nh, L, D).
        scale = scale.reshape(bs, nh, q_dim)[:, :, None, :]                # (bs, nh, 1, D)
        q = q * (scale * inv_temp)
        k = k * scale
    else:
        q = q * inv_temp            # fold 1/temperature once, outside the kernel

    # bf16 operands (MXU-native, halves q/k/v HBM traffic) + head-fused layout.
    NL = nh * q_len
    q_bf = q.astype(jnp.bfloat16).reshape(bs, NL, q_dim)
    k_bf = k.astype(jnp.bfloat16).reshape(bs, NL, q_dim)
    v_bf = v.astype(jnp.bfloat16).reshape(bs, NL, q_dim)

    # Additive mask bias for the head-fused (NL, NL) score matrix:
    #   in-head & unmasked ->    0
    #   in-head & masked   -> -1e9  (matches PyTorch masked_fill)
    #   off-head blocks    -> -2e9  (strictly lower, so a fully-masked row
    #                                still softmaxes uniformly over its head)
    if mask is None:
        bias_small = jnp.zeros((bs, q_len, q_len), jnp.float32)
    else:
        if mask.ndim == 4:
            mask = mask[:, 0]        # head-broadcast mask (see TODO at top)
        bias_small = jnp.where(mask == 0, jnp.float32(_NEG_MASK),
                               jnp.float32(0.0))
    head_id = jnp.arange(NL) // q_len
    same_head = head_id[:, None] == head_id[None, :]                     # (NL, NL)
    bias = jnp.where(same_head[None],
                     jnp.tile(bias_small, (1, nh, nh)),
                     jnp.float32(_NEG_HEAD))                             # (bs, NL, NL)

    return _attention_pallas(q_bf, k_bf, v_bf, bias,
                             n_head=nh, q_len=q_len, out_dtype=out_dtype,
                             return_attn=return_attn, attn_dtype=attn_dtype)


# --------------------------------------------------------------------------
# Pure-JAX reference (mirrors the PyTorch module)
# --------------------------------------------------------------------------
def _reference(q, k, v, mask, g, params, hidden_size, n_head, gating,
               matmul_dtype=jnp.float32):
    temperature = float(hidden_size) ** 0.5
    bs, nh, q_len, q_dim = q.shape
    if gating:
        g_avg = jnp.mean(g, axis=1)
        gate_values = g_avg @ params["gating_w"].T + params["gating_b"]
        scale = 1.0 + jax.nn.sigmoid(gate_values + params["gating_bias"])
        q_flat = jnp.transpose(q, (0, 2, 1, 3)).reshape(bs, q_len, -1) * scale[:, None, :]
        k_flat = jnp.transpose(k, (0, 2, 1, 3)).reshape(bs, q_len, -1) * scale[:, None, :]
        q = jnp.transpose(q_flat.reshape(bs, q_len, nh, q_dim), (0, 2, 1, 3))
        k = jnp.transpose(k_flat.reshape(bs, q_len, nh, q_dim), (0, 2, 1, 3))
    qs = (q / temperature).astype(matmul_dtype)
    ks = k.astype(matmul_dtype)
    scores = jnp.einsum("bhqd,bhkd->bhqk", qs, ks,
                        preferred_element_type=jnp.float32)
    if mask is not None:
        scores = jnp.where(mask == 0, -1e9, scores)
    attn = jax.nn.softmax(scores, axis=-1)
    out = jnp.einsum("bhqk,bhkd->bhqd",
                     attn.astype(matmul_dtype), v.astype(matmul_dtype),
                     preferred_element_type=jnp.float32)
    return out, attn


if __name__ == "__main__":
    bs, n_head, q_len, hidden = 2, 2, 8, 32

    key = jax.random.PRNGKey(0)
    kq, kk, kv, kg, km, kw = jax.random.split(key, 6)

    q = jax.random.normal(kq, (bs, n_head, q_len, hidden), jnp.float32)
    k = jax.random.normal(kk, (bs, n_head, q_len, hidden), jnp.float32)
    v = jax.random.normal(kv, (bs, n_head, q_len, hidden), jnp.float32)
    g = jax.random.normal(kg, (bs, q_len, hidden), jnp.float32)
    # mask: (bs, 1, q_len, q_len), broadcast over heads; keep diagonal valid.
    mask = (jax.random.uniform(km, (bs, 1, q_len, q_len)) > 0.3).astype(jnp.float32)
    mask = jnp.maximum(mask, jnp.eye(q_len, dtype=jnp.float32)[None, None])

    params = {
        "gating_w": 0.02 * jax.random.normal(kw, (n_head * hidden, hidden), jnp.float32),
        "gating_b": jnp.zeros((n_head * hidden,), jnp.float32),
        "gating_bias": jnp.ones((n_head * hidden,), jnp.float32),
    }

    # Full path (returns both output and attention probabilities).
    out, attn = scaled_dot_product_attention(
        q, k, v, mask=mask, g=g,
        hidden_size=hidden, n_head=n_head, gating=True, params=params,
        return_attn=True)
    jax.block_until_ready((out, attn))

    # Fast path: skip materializing the probability matrix.
    out_only, _ = scaled_dot_product_attention(
        q, k, v, mask=mask, g=g,
        hidden_size=hidden, n_head=n_head, gating=True, params=params,
        return_attn=False)
    jax.block_until_ready(out_only)

    # Precision-matched reference (bf16 matmuls, f32 accumulation) — tight check.
    ref_bf_out, ref_bf_attn = _reference(q, k, v, mask, g, params, hidden,
                                         n_head, True, matmul_dtype=jnp.bfloat16)
    assert jnp.allclose(out, ref_bf_out, atol=1e-2, rtol=1e-2)
    assert jnp.allclose(attn, ref_bf_attn, atol=1e-2, rtol=1e-2)

    # Full-f32 reference — loose check (bf16 matmuls trade a little precision).
    ref_f32_out, ref_f32_attn = _reference(q, k, v, mask, g, params, hidden,
                                           n_head, True, matmul_dtype=jnp.float32)
    assert jnp.allclose(out, ref_f32_out, atol=5e-2, rtol=5e-2)
    assert jnp.allclose(attn, ref_f32_attn, atol=5e-2, rtol=5e-2)

    # The attn-free path must produce the same output.
    assert jnp.allclose(out_only, out, atol=1e-6, rtol=1e-6)

    print("KERNEL_OK")
</pallas_src>

<mosaic_0001>
module attributes {stable_mosaic.version = 11 : i64} {
  func.func @kernel(%arg0: i32, %arg1: memref<2x16x32xbf16, #tpu.memory_space<vmem>>, %arg2: memref<2x16x32xbf16, #tpu.memory_space<vmem>>, %arg3: memref<2x16x32xbf16, #tpu.memory_space<vmem>>, %arg4: memref<2x16x16xf32, #tpu.memory_space<vmem>>, %arg5: memref<2x512xf32, #tpu.memory_space<vmem>>, %arg6: memref<2x128xf32, #tpu.memory_space<vmem>>) attributes {dimension_semantics = [#tpu.dimension_semantics<parallel>], iteration_bounds = array<i64: 1>, scalar_prefetch = 0 : i64, scratch_operands = 0 : i64, tpu.core_type = #tpu.core_type<tc>, window_params = [{transform_indices = @transform_0, window_bounds = array<i64: 2, 16, 32>}, {transform_indices = @transform_1, window_bounds = array<i64: 2, 16, 32>}, {transform_indices = @transform_2, window_bounds = array<i64: 2, 16, 32>}, {transform_indices = @transform_3, window_bounds = array<i64: 2, 16, 16>}, {transform_indices = @transform_4, window_bounds = array<i64: 2, 512>}, {transform_indices = @transform_5, window_bounds = array<i64: 2, 128>}]} {
    %c0 = arith.constant 0 : index
    %c0_0 = arith.constant 0 : index
    %c0_1 = arith.constant 0 : index
    %0 = vector.load %arg1[%c0, %c0_0, %c0_1] : memref<2x16x32xbf16, #tpu.memory_space<vmem>>, vector<2x16x32xbf16>
    %c0_2 = arith.constant 0 : index
    %c0_3 = arith.constant 0 : index
    %c0_4 = arith.constant 0 : index
    %1 = vector.load %arg2[%c0_2, %c0_3, %c0_4] : memref<2x16x32xbf16, #tpu.memory_space<vmem>>, vector<2x16x32xbf16>
    %c0_5 = arith.constant 0 : index
    %c0_6 = arith.constant 0 : index
    %c0_7 = arith.constant 0 : index
    %2 = vector.load %arg3[%c0_5, %c0_6, %c0_7] : memref<2x16x32xbf16, #tpu.memory_space<vmem>>, vector<2x16x32xbf16>
    %c0_8 = arith.constant 0 : index
    %c0_9 = arith.constant 0 : index
    %c0_10 = arith.constant 0 : index
    %3 = vector.load %arg4[%c0_8, %c0_9, %c0_10] : memref<2x16x16xf32, #tpu.memory_space<vmem>>, vector<2x16x16xf32>
    "tpu.trace_start"() <{level = 10 : i32, message = "bmd,bnd->bmn"}> : () -> ()
    %cst = arith.constant dense<0.000000e+00> : vector<2x16x16xf32>
    %4 = tpu.matmul %0, %1, %cst {dimension_numbers = #tpu.dot_dimension_numbers<[2], [2], [1], [1], [0, 0, 0, 1, 1, 1], [0], [0]>} : vector<2x16x32xbf16>, vector<2x16x32xbf16>, vector<2x16x16xf32> -> vector<2x16x16xf32>
    "tpu.trace_stop"() : () -> ()
    %5 = arith.addf %4, %3 : vector<2x16x16xf32>
    %cst_11 = arith.constant dense<0xFF800000> : vector<2x16xf32>
    %6 = vector.multi_reduction <maximumf>, %5, %cst_11 [2] : vector<2x16x16xf32> to vector<2x16xf32>
    %7 = vector.shape_cast %6 : vector<2x16xf32> to vector<2x16x1xf32>
    %8 = vector.broadcast %7 : vector<2x16x1xf32> to vector<2x16x16xf32>
    %9 = arith.subf %5, %8 : vector<2x16x16xf32>
    %10 = math.exp %9 : vector<2x16x16xf32>
    %cst_12 = arith.constant dense<0.000000e+00> : vector<2x16xf32>
    %11 = vector.multi_reduction <add>, %10, %cst_12 [2] : vector<2x16x16xf32> to vector<2x16xf32>
    %12 = vector.shape_cast %11 : vector<2x16xf32> to vector<2x16x1xf32>
    %13 = vector.broadcast %12 : vector<2x16x1xf32> to vector<2x16x16xf32>
    %14 = arith.divf %10, %13 : vector<2x16x16xf32>
    %15 = arith.truncf %14 : vector<2x16x16xf32> to vector<2x16x16xbf16>
    "tpu.trace_start"() <{level = 10 : i32, message = "bmn,bnd->bmd"}> : () -> ()
    %cst_13 = arith.constant dense<0.000000e+00> : vector<2x16x32xf32>
    %16 = tpu.matmul %15, %2, %cst_13 {dimension_numbers = #tpu.dot_dimension_numbers<[2], [1], [1], [2], [0, 0, 0, 1, 1, 2], [0], [0]>} : vector<2x16x16xbf16>, vector<2x16x32xbf16>, vector<2x16x32xf32> -> vector<2x16x32xf32>
    "tpu.trace_stop"() : () -> ()
    %17 = vector.shape_cast %16 : vector<2x16x32xf32> to vector<2x512xf32>
    %c0_14 = arith.constant 0 : index
    %c0_15 = arith.constant 0 : index
    %18 = vector.load %arg5[%c0_14, %c0_15] : memref<2x512xf32, #tpu.memory_space<vmem>>, vector<2x512xf32>
    tpu.vector_store %arg5[%c0_14, %c0_15], %17 {strides = array<i32>} : memref<2x512xf32, #tpu.memory_space<vmem>>, vector<2x512xf32>,
    %19 = vector.extract_strided_slice %14 {offsets = [0, 0, 0], sizes = [2, 8, 8], strides = [1, 1, 1]} : vector<2x16x16xf32> to vector<2x8x8xf32>
    %20 = vector.extract_strided_slice %14 {offsets = [0, 8, 8], sizes = [2, 8, 8], strides = [1, 1, 1]} : vector<2x16x16xf32> to vector<2x8x8xf32>
    %21 = tpu.concatenate %19, %20 in 1 : vector<2x8x8xf32>, vector<2x8x8xf32> -> vector<2x16x8xf32>
    %22 = vector.shape_cast %21 : vector<2x16x8xf32> to vector<2x128xf32>
    %c0_16 = arith.constant 0 : index
    %c0_17 = arith.constant 0 : index
    %23 = vector.load %arg6[%c0_16, %c0_17] : memref<2x128xf32, #tpu.memory_space<vmem>>, vector<2x128xf32>
    tpu.vector_store %arg6[%c0_16, %c0_17], %22 {strides = array<i32>} : memref<2x128xf32, #tpu.memory_space<vmem>>, vector<2x128xf32>,
    return
  }
  func.func @transform_0(%arg0: i32) -> (i32, i32, i32) {
    %c0_i32 = arith.constant 0 : i32
    %c0_i32_0 = arith.constant 0 : i32
    %c0_i32_1 = arith.constant 0 : i32
    return %arg0, %c0_i32, %c0_i32_0 : i32, i32, i32
  }
  func.func @transform_1(%arg0: i32) -> (i32, i32, i32) {
    %c0_i32 = arith.constant 0 : i32
    %c0_i32_0 = arith.constant 0 : i32
    %c0_i32_1 = arith.constant 0 : i32
    return %arg0, %c0_i32, %c0_i32_0 : i32, i32, i32
  }
  func.func @transform_2(%arg0: i32) -> (i32, i32, i32) {
    %c0_i32 = arith.constant 0 : i32
    %c0_i32_0 = arith.constant 0 : i32
    %c0_i32_1 = arith.constant 0 : i32
    return %arg0, %c0_i32, %c0_i32_0 : i32, i32, i32
  }
  func.func @transform_3(%arg0: i32) -> (i32, i32, i32) {
    %c0_i32 = arith.constant 0 : i32
    %c0_i32_0 = arith.constant 0 : i32
    %c0_i32_1 = arith.constant 0 : i32
    return %arg0, %c0_i32, %c0_i32_0 : i32, i32, i32
  }
  func.func @transform_4(%arg0: i32) -> (i32, i32) {
    %c0_i32 = arith.constant 0 : i32
    %c0_i32_0 = arith.constant 0 : i32
    return %arg0, %c0_i32 : i32, i32
  }
  func.func @transform_5(%arg0: i32) -> (i32, i32) {
    %c0_i32 = arith.constant 0 : i32
    %c0_i32_0 = arith.constant 0 : i32
    return %arg0, %c0_i32 : i32, i32
  }
}

</mosaic_0001>

<bundles_post_ra>
// kernel: tpu_custom_call.1
= control target key start
LH: loop header
LB: loop body
LE: loop exit
PB: predicated region body
PF: predicated region fallthrough
CT: control target
= control target key end

     0   :  { %11 = vsyncpa [#allocation3], 0  ;;  %s1364_s0 = inlined_call_operand.hbm [shape: bf16[2,16,32], index: 0, kind: input, shape index: {}]   ;;  %s1365_s1 = inlined_call_operand.hbm [shape: bf16[2,16,32], index: 1, kind: input, shape index: {}]   ;;  %s1366_s2 = inlined_call_operand.hbm [shape: bf16[2,16,32], index: 2, kind: input, shape index: {}]   ;;  %s1367_s3 = inlined_call_operand.hbm [shape: f32[2,16,16], index: 3, kind: input, shape index: {}]   ;;  %s1368_s4 = inlined_call_operand.hbm [shape: f32[2,512], index: 4, kind: output, shape index: {0}]   ;;  %s1369_s5 = inlined_call_operand.hbm [shape: f32[2,128], index: 5, kind: output, shape index: {1}]  }
   0x1   :  { %12 = vsyncpa [#allocation6], 0 }
   0x2   :  { %13 = vsyncpa [#allocation9], 0 }
   0x3   :  { %14 = vsyncpa [#allocation4], 0 }
   0x4   :  { %15 = vsyncpa [#allocation12], 0  ;;  %s1063_s18 = smov [#allocation5]   ;;  %s1064_s20 = smov [#allocation2]  }
   0x5   :  { %s33_s19 = sshll.u32 %s1063_s18, 4  ;;  %s21_s21 = sshll.u32 %s1064_s20, 4  ;;  %s34_s19 = int_to_ptr.vmem [resolvable:$true] %s33_s19  ;;  %s1120_s21 = int_to_ptr.vmem [resolvable:$true] %s21_s21 }
   0x6   :  { %s921_s24 = scalar_lea.hbm %s1365_s1, 256 }
   0x7   :  { %p922_p0 = scmp.ne.s32.totalorder %s1365_s1, %s921_s24  ;;  %p925_p1 = scmp.lt.u32.totalorder %s921_s24, %s1365_s1 }
   0x9   :  { %p927_p2 = pnand %p925_p1, %p922_p0 }
   0xb   :  { %930 = shalt.err (!%p927_p2)
}
   0xc   :  { %s931_s29 = scalar_lea.vmem %s34_s19, 256  ;;  %p936_p4 = scmp.lt.s32.totalorder %s34_s19, %s34_s19 }
   0xd   :  { %p932_p3 = scmp.ne.s32.totalorder %s34_s19, %s931_s29  ;;  %p937_p5 = scmp.lt.s32.totalorder %s931_s29, %s931_s29 }
   0xf   :  { %p938_p6 = por %p937_p5, %p936_p4 }
  0x11   :  { %p939_p7 = pnand %p938_p6, %p932_p3 }
  0x13   :  { %942 = shalt.err (!%p939_p7)
}
  0x14   :  { %s1065_s30 = smov 64   ;;  %s1066_s6 = smov 4  }
  0x15   :  { %39 = dma.hbm_to_vmem [thread:$0]  %s1365_s1, 256, %s34_s19, [#allocation6], %s1065_s30, %s1065_s30, %s1066_s6  }
  0x16   :  { %s943_s11 = scalar_lea.hbm %s1364_s0, 256 }
  0x17   :  { %p944_p8 = scmp.ne.s32.totalorder %s1364_s0, %s943_s11  ;;  %p947_p9 = scmp.lt.u32.totalorder %s943_s11, %s1364_s0 }
  0x19   :  { %p949_p10 = pnand %p947_p9, %p944_p8 }
  0x1b   :  { %952 = shalt.err (!%p949_p10)
}
  0x1c   :  { %s953_s16 = scalar_lea.vmem %s1120_s21, 256  ;;  %p958_p12 = scmp.lt.s32.totalorder %s1120_s21, %s1120_s21 }
  0x1d   :  { %p954_p11 = scmp.ne.s32.totalorder %s1120_s21, %s953_s16  ;;  %p959_p13 = scmp.lt.s32.totalorder %s953_s16, %s953_s16 }
  0x1f   :  { %p960_p0 = por %p959_p13, %p958_p12 }
  0x21   :  { %p961_p1 = pnand %p960_p0, %p954_p11 }
  0x23   :  { %964 = shalt.err (!%p961_p1)
}
  0x24   :  { %27 = dma.hbm_to_vmem [thread:$0]  %s1364_s0, 256, %s1120_s21, [#allocation3], %s1065_s30, %s1065_s30, %s1066_s6  }
  0x25   :  { %s1067_s18 = smov [#allocation7]   ;;  %s1068_s20 = smov [#allocation8]  }
  0x26   :  { %s45_s19 = sshll.u32 %s1067_s18, 4  ;;  %s57_s22 = sshll.u32 %s1068_s20, 4  ;;  %s46_s19 = int_to_ptr.vmem [resolvable:$true] %s45_s19  ;;  %s1157_s22 = int_to_ptr.vmem [resolvable:$true] %s57_s22 }
  0x27   :  { %s965_s25 = scalar_lea.hbm %s1366_s2, 256 }
  0x28   :  { %p966_p2 = scmp.ne.s32.totalorder %s1366_s2, %s965_s25  ;;  %p969_p3 = scmp.lt.u32.totalorder %s965_s25, %s1366_s2 }
  0x2a   :  { %p971_p4 = pnand %p969_p3, %p966_p2 }
  0x2c   :  { %974 = shalt.err (!%p971_p4)
}
  0x2d   :  { %s975_s0 = scalar_lea.vmem %s46_s19, 256  ;;  %p980_p6 = scmp.lt.s32.totalorder %s46_s19, %s46_s19 }
  0x2e   :  { %p976_p5 = scmp.ne.s32.totalorder %s46_s19, %s975_s0  ;;  %p981_p7 = scmp.lt.s32.totalorder %s975_s0, %s975_s0 }
  0x30   :  { %p982_p8 = por %p981_p7, %p980_p6 }
  0x32   :  { %p983_p9 = pnand %p982_p8, %p976_p5 }
  0x34   :  { %986 = shalt.err (!%p983_p9)
}
  0x35   :  { %51 = dma.hbm_to_vmem [thread:$0]  %s1366_s2, 256, %s46_s19, [#allocation6], %s1065_s30, %s1065_s30, %s1066_s6  }
  0x36   :  { %s987_s10 = scalar_lea.hbm %s1367_s3, 512 }
  0x37   :  { %p988_p10 = scmp.ne.s32.totalorder %s1367_s3, %s987_s10  ;;  %p991_p11 = scmp.lt.u32.totalorder %s987_s10, %s1367_s3 }
  0x39   :  { %p993_p12 = pnand %p991_p11, %p988_p10 }
  0x3b   :  { %996 = shalt.err (!%p993_p12)
}
  0x3c   :  { %s997_s15 = scalar_lea.vmem %s1157_s22, 512  ;;  %p1002_p0 = scmp.lt.s32.totalorder %s1157_s22, %s1157_s22 }
  0x3d   :  { %p998_p13 = scmp.ne.s32.totalorder %s1157_s22, %s997_s15  ;;  %p1003_p1 = scmp.lt.s32.totalorder %s997_s15, %s997_s15 }
  0x3f   :  { %p1004_p2 = por %p1003_p1, %p1002_p0 }
  0x41   :  { %p1005_p3 = pnand %p1004_p2, %p998_p13 }
  0x43   :  { %1008 = shalt.err (!%p1005_p3)
}
  0x44   :  { %s1069_s2 = smov 128   ;;  %s1070_s6 = smov 8  }
  0x45   :  { %63 = dma.hbm_to_vmem [thread:$0]  %s1367_s3, 512, %s1157_s22, [#allocation9], %s1069_s2, %s1069_s2, %s1070_s6  }
  0x46   :  { %1053 = dma.done.wait [#allocation3], 256  }
  0x47   :  { %1054 = vsyncadd [#allocation3], 4294967040 }
  0x48   :  { %1055 = dma.done.wait [#allocation6], 512  }
  0x49   :  { %1056 = vsyncadd [#allocation6], 4294966784 }
  0x4a   :  { %1057 = dma.done.wait [#allocation9], 512  }
  0x4b   :  { %1058 = vsyncadd [#allocation9], 4294966784  ;;  %v1071_v0 = vmov 0.0   ;;  %vm1072_vm0 = vmmov 0   ;;  %vm103_vm1 = vcmask 261120   ;;  %v899_v1 = vld [vmem:[#allocation5] sm:$0xff]   ;;  %v359_v54 = vlaneseq }
  0x4c   :  { %848 = vmatprep.subr.bf16.mxu0 %v1071_v0  ;;  %854 = vmatprep.subr.bf16.mxu1 %v1071_v0  ;;  %v900_v2 = vld [vmem:[#allocation5 + $0x8] sm:$0xff]   ;;  %v108_v3 = vsel %vm103_vm1, %v899_v1, 0  ;;  %v901_v5 = vld [vmem:[#allocation2] sm:$0xff]   ;;  %v902_v6 = vld [vmem:[#allocation2 + $0x8] sm:$0xff]   ;;  %vm208_vm2 = vcmask 130048   ;;  %s1075_s3 = smov 120  }
  0x4d   :  { %850 = vmatprep.mubr.msk.bf16.mxu0 %vm1072_vm0, %v1071_v0  ;;  %856 = vmatprep.mubr.msk.bf16.mxu1 %vm1072_vm0, %v1071_v0  ;;  %v165_v4 = vsel %vm103_vm1, %v900_v2, 0  ;;  %v89_v7 = vld [vmem:[#allocation8] sm:$0xff]  ;;  %v91_v8 = vld [vmem:[#allocation8 + $0x10] sm:$0xff]  ;;  %v90_v10 = vld [vmem:[#allocation8 + $0x8] sm:$0xff]  ;;  %v1073_v52 = vmov 1983009808  }
  0x4e   :  { %849 = vmatpush3.bf16.xpose.msra.mxu0 %v108_v3  ;;  %855 = vmatpush3.bf16.xpose.msra.mxu1 %v165_v4  ;;  %v92_v14 = vld [vmem:[#allocation8 + $0x18] sm:$0xff]  ;;  %v903_v47 = vld [vmem:[#allocation7] sm:$0xff]   ;;  %v357_v53 = vunpack.c.l.s4 %v1073_v52  ;;  %v360_v58 = vshrl.u32 %v359_v54, 7  ;;  %v1074_v59 = vmov 1934713408   ;;  %s1076_s17 = smov 16  }
  0x4f   :  { %860 = vmatprep.subr.bf16.mxu0 %v1071_v0  ;;  %866 = vmatprep.subr.bf16.mxu1 %v1071_v0  ;;  %v904_v48 = vld [vmem:[#allocation7 + $0x8] sm:$0xff]   ;;  %v388_v60 = vunpack.c.l.s4 %v1074_v59  ;;  %s1077_s18 = smov 24   ;;  %s1078_s19 = smov 40   ;;  %vm772_vm3 = vcmask 64512   ;;  %vm775_vm4 = vcmask 195584   ;;  %vm778_vm5 = vcmask 326656  }
  0x50   :  { %v358_v57 = vunpack.c.0.s8 %v357_v53  ;;  %s1079_s20 = smov 32   ;;  %s1080_s22 = smov 56   ;;  %vm780_vm6 = vcmask 392192   ;;  %vm782_vm7 = vcmask 457728   ;;  %vm536_vm8 = vcmask 523264  }
  0x51   :  { %v389_v1 = vunpack.c.0.s8 %v388_v60  ;;  %s1081_s23 = smov 48   ;;  %s1082_s24 = smov 72   ;;  %vm785_vm9 = vcmask 588800   ;;  %vm538_vm10 = vcmask 785408   ;;  %vm787_vm11 = vcmask 654336  }
  0x52   :  { %v1216_v63 = vsub.s32 %v358_v57, %v360_v58  ;;  %s1083_s25 = smov 80   ;;  %s1084_s26 = smov 88   ;;  %vm789_vm12 = vcmask 719872   ;;  %vm792_vm13 = vcmask 850944   ;;  %vm794_vm14 = vcmask 916480  }
  0x53   :  { %s1085_s27 = smov 96   ;;  %s1087_s28 = smov 112   ;;  %vm796_vm15 = vcmask 982016  }
  0x54   :  { %s1088_s29 = smov [#allocation10]   ;;  %s1089_s21 = smov [#allocation11]  }
  0x55   :  { %851 = vmatmul.mubr.msk.bf16.vlgmr.msra.gmra.mrb[0].mxu0 %vm103_vm1, %v901_v5  ;;  %857 = vmatmul.mubr.msk.bf16.vlgmr.msra.gmra.mrb[0].mxu1 %vm103_vm1, %v902_v6  ;;  %s805_s0 = sshll.u32 %s1088_s29, 4  ;;  %s815_s7 = sshll.u32 %s1089_s21, 4  ;;  %s806_s0 = int_to_ptr.vmem [resolvable:$true] %s805_s0  ;;  %s816_s7 = int_to_ptr.vmem [resolvable:$true] %s815_s7 }
  0x56   :  { %862 = vmatprep.mubr.msk.bf16.mxu0 %vm1072_vm0, %v1071_v0  ;;  %868 = vmatprep.mubr.msk.bf16.mxu1 %vm1072_vm0, %v1071_v0  ;;  %s1009_s8 = scalar_lea.vmem %s806_s0, 128  ;;  %p1014_p5 = scmp.lt.s32.totalorder %s806_s0, %s806_s0 }
  0x57   :  { %861 = vmatpush3.bf16.msra.mxu0 %v903_v47  ;;  %867 = vmatpush3.bf16.msra.mxu1 %v904_v48  ;;  %p1010_p4 = scmp.ne.s32.totalorder %s806_s0, %s1009_s8  ;;  %p1015_p6 = scmp.lt.s32.totalorder %s1009_s8, %s1009_s8 }
  0x59   :  { %p1016_p7 = por %p1015_p6, %p1014_p5 }
  0x5b   :  { %p1017_p8 = pnand %p1016_p7, %p1010_p4 }
 0x128   :  { %v144_v9 = vpop.f32.mrb[0].mxu0  ;;  %v201_v12 = vpop.f32.mrb[0].mxu1 }
 0x129   :  { %v145_v11 = vadd.f32 %v144_v9, %v89_v7  ;;  %v852_v13 = vpop.f32.mrb[1].mxu0  ;;  %v202_v15 = vadd.f32 %v201_v12, %v91_v8  ;;  %v858_v17 = vpop.f32.mrb[1].mxu1  ;;  %v1220_v8 = vsub.s32 %v389_v1, %v360_v58 }
 0x12a   :  { %v147_v16 = vpop.f32.mrb[2].mxu0  ;;  %v204_v20 = vpop.f32.mrb[2].mxu1 }
 0x12b   :  { %v148_v18 = vadd.f32 %v147_v16, %v90_v10  ;;  %v853_v19 = vpop.f32.mrb[3].mxu0  ;;  %v209_v21 = vsel %vm208_vm2, %v145_v11, -inf  ;;  %v205_v22 = vadd.f32 %v204_v20, %v92_v14  ;;  %v215_v23 = vsel %vm208_vm2, %v202_v15, -inf  ;;  %v859_v24 = vpop.f32.mrb[3].mxu1 }
 0x12c   :  { %210 = vmax.xlane.f32.xlu0 %v209_v21  ;;  %216 = vmax.xlane.f32.xlu1 %v215_v23 }
 0x12d   :  { %v218_v25 = vsel %vm208_vm2, %v205_v22, -inf  ;;  %v212_v26 = vsel %vm208_vm2, %v148_v18, -inf }
 0x130   :  { %213 = vmax.xlane.f32.xlu0 %v212_v26  ;;  %219 = vmax.xlane.f32.xlu1 %v218_v25 }
 0x1b9   :  { %v211_v27 = vpop.xlane.xlu0 %210  ;;  %v217_v28 = vpop.xlane.xlu1 %216 }
 0x1ba   :  { %v221_v29 = vsub.f32 %v145_v11, %v211_v27  ;;  %v223_v30 = vsub.f32 %v202_v15, %v217_v28 }
 0x1bc   :  { %v225_v31 = vmul.f32 1.442695, %v221_v29  ;;  %v229_v32 = vmul.f32 1.442695, %v223_v30 }
 0x1bd   :  { %v214_v33 = vpop.xlane.xlu0 %213  ;;  %v220_v34 = vpop.xlane.xlu1 %219 }
 0x1be   :  { %905 = vpow2.f32 %v225_v31  ;;  %v222_v35 = vsub.f32 %v148_v18, %v214_v33  ;;  %v224_v36 = vsub.f32 %v205_v22, %v220_v34 }
 0x1bf   :  { %907 = vpow2.f32 %v229_v32 }
 0x1c0   :  { %v227_v37 = vmul.f32 1.442695, %v222_v35  ;;  %v231_v38 = vmul.f32 1.442695, %v224_v36 }
 0x1c2   :  { %909 = vpow2.f32 %v227_v37 }
 0x1c3   :  { %911 = vpow2.f32 %v231_v38 }
 0x1c8   :  { %v906_v39 = vpop.eup %905 }
 0x1c9   :  { %v233_v40 = vsel %vm208_vm2, %v906_v39, 0.0  ;;  %v908_v41 = vpop.eup %907 }
 0x1ca   :  { %234 = vadd.xlane.f32.xlu0 %v233_v40  ;;  %v239_v43 = vsel %vm208_vm2, %v908_v41, 0.0 }
 0x1cc   :  { %v910_v42 = vpop.eup %909 }
 0x1cd   :  { %v236_v44 = vsel %vm208_vm2, %v910_v42, 0.0  ;;  %v912_v45 = vpop.eup %911 }
 0x1ce   :  { %240 = vadd.xlane.f32.xlu0 %v239_v43  ;;  %237 = vadd.xlane.f32.xlu1 %v236_v44  ;;  %v242_v46 = vsel %vm208_vm2, %v912_v45, 0.0 }
 0x1d2   :  { %243 = vadd.xlane.f32.xlu1 %v242_v46 }
 0x257   :  { %v235_v49 = vpop.xlane.xlu0 %234 }
 0x258   :  { %913 = vrcp.f32 %v235_v49 }
 0x25b   :  { %v238_v50 = vpop.xlane.xlu1 %237  ;;  %v241_v51 = vpop.xlane.xlu0 %240 }
 0x25c   :  { %915 = vrcp.f32 %v238_v50 }
 0x25d   :  { %917 = vrcp.f32 %v241_v51 }
 0x25f   :  { %v244_v55 = vpop.xlane.xlu1 %243 }
 0x260   :  { %919 = vrcp.f32 %v244_v55 }
 0x262   :  { %v914_v56 = vpop.eup %913 }
 0x263   :  { %v246_v61 = vmul.f32 %v914_v56, %v906_v39 }
 0x265   :  { %v580_v5 = vcombine.high %v246_v61, %v1071_v0  ;;  %v587_v9 = vrot.slane %v246_v61, %v1216_v63 }
 0x266   :  { %v916_v62 = vpop.eup %915 }
 0x267   :  { %v918_v2 = vpop.eup %917  ;;  %v248_v3 = vmul.f32 %v916_v62, %v910_v42  ;;  %v594_v15 = vrot.slane %v580_v5, %v1216_v63 }
 0x268   :  { %v250_v4 = vmul.f32 %v918_v2, %v908_v41 }
 0x269   :  { %574 = vrot.lane.b32.xlu0 %v248_v3, %s1075_s3  ;;  %v253_v6 = vpack.c.bf16 %v248_v3, %v246_v61 }
 0x26a   :  { %v920_v7 = vpop.eup %919  ;;  %v602_v10 = vrot.slane %v250_v4, %v1216_v63  ;;  %v595_v11 = vcombine.high %v250_v4, %v1071_v0 }
 0x26b   :  { %863 = vmatmul.mubr.msk.bf16.vlgmr.msra.gmra.mrb[4].mxu0 %vm208_vm2, %v253_v6  ;;  %v252_v12 = vmul.f32 %v920_v7, %v912_v45 }
 0x26c   :  { %v611_v13 = vcombine.high %v587_v9, %v602_v10  ;;  %v610_v14 = vcombine.low %v587_v9, %v602_v10  ;;  %v609_v16 = vrot.slane %v595_v11, %v1216_v63 }
 0x26d   :  { %576 = vrot.lane.b32.xlu1 %v252_v12, %s1075_s3  ;;  %v254_v17 = vpack.c.bf16 %v252_v12, %v250_v4 }
 0x26e   :  { %v625_v18 = vrot.slane %v611_v13, %v1220_v8  ;;  %v626_v19 = vcombine.low %v594_v15, %v609_v16  ;;  %v1232_v20 = vrot.slane %v610_v14, %v1220_v8  ;;  %v627_v23 = vcombine.high %v594_v15, %v609_v16 }
 0x26f   :  { %869 = vmatmul.mubr.msk.bf16.vlgmr.msra.gmra.mrb[4].mxu1 %vm208_vm2, %v254_v17 }
 0x270   :  { %v643_v21 = vcombine.high %v625_v18, %v1071_v0  ;;  %v634_v22 = vrot.slane %v626_v19, %v1220_v8  ;;  %v642_v24 = vcombine.high %v1232_v20, %v1071_v0  ;;  %v641_v26 = vrot.slane %v627_v23, %v1220_v8 }
 0x271   :  { %717 = vrot.lane.b32.xlu1 %v625_v18, %s1076_s17 }
 0x272   :  { %721 = vrot.lane.b32.xlu0 %v643_v21, %s1077_s18  ;;  %v644_v25 = vcombine.high %v634_v22, %v1071_v0  ;;  %v645_v27 = vcombine.high %v641_v26, %v1071_v0 }
 0x275   :  { %713 = vrot.lane.b32.xlu1 %v642_v24, %s1070_s6 }
 0x276   :  { %729 = vrot.lane.b32.xlu0 %v644_v25, %s1078_s19 }
 0x279   :  { %725 = vrot.lane.b32.xlu1 %v634_v22, %s1079_s20 }
 0x27a   :  { %737 = vrot.lane.b32.xlu0 %v645_v27, %s1080_s22 }
 0x27d   :  { %733 = vrot.lane.b32.xlu1 %v641_v26, %s1081_s23 }
 0x2db   :  { %v575_v28 = vpop.permute.xlu0 %574 }
 0x2dc   :  { %v646_v29 = vcombine.high %v575_v28, %v1071_v0  ;;  %v653_v31 = vrot.slane %v575_v28, %v1216_v63 }
 0x2de   :  { %v1248_v34 = vrot.slane %v646_v29, %v1216_v63 }
 0x2df   :  { %v577_v30 = vpop.permute.xlu1 %576 }
 0x2e0   :  { %v661_v32 = vcombine.high %v577_v30, %v1071_v0  ;;  %v668_v33 = vrot.slane %v577_v30, %v1216_v63 }
 0x2e2   :  { %v1251_v35 = vrot.slane %v661_v32, %v1216_v63  ;;  %v677_v36 = vcombine.high %v653_v31, %v668_v33  ;;  %v676_v37 = vcombine.low %v653_v31, %v668_v33 }
 0x2e3   :  { %v718_v32 = vpop.permute.xlu1 %717 }
 0x2e4   :  { %v692_v38 = vcombine.low %v1248_v34, %v1251_v35  ;;  %v693_v39 = vcombine.high %v1248_v34, %v1251_v35  ;;  %v684_v40 = vrot.slane %v676_v37, %v1220_v8  ;;  %v691_v42 = vrot.slane %v677_v36, %v1220_v8  ;;  %v722_v36 = vpop.permute.xlu0 %721 }
 0x2e6   :  { %741 = vrot.lane.b32.xlu1 %v684_v40, %s1065_s30  ;;  %v708_v41 = vcombine.high %v684_v40, %v1071_v0  ;;  %v709_v43 = vcombine.high %v691_v42, %v1071_v0  ;;  %v700_v28 = vrot.slane %v692_v38, %v1220_v8  ;;  %v707_v30 = vrot.slane %v693_v39, %v1220_v8 }
 0x2e7   :  { %v714_v33 = vpop.permute.xlu1 %713 }
 0x2e8   :  { %745 = vrot.lane.b32.xlu0 %v708_v41, %s1082_s24  ;;  %v710_v29 = vcombine.high %v700_v28, %v1071_v0  ;;  %v711_v31 = vcombine.high %v707_v30, %v1071_v0  ;;  %v730_v38 = vpop.permute.xlu0 %729  ;;  %v773_v35 = vsel %vm772_vm3, %v1232_v20, %v714_v33 }
 0x2ea   :  { %749 = vrot.lane.b32.xlu1 %v691_v42, %s1083_s25 }
 0x2eb   :  { %v726_v37 = vpop.permute.xlu1 %725 }
 0x2ec   :  { %753 = vrot.lane.b32.xlu0 %v709_v43, %s1084_s26  ;;  %v738_v41 = vpop.permute.xlu0 %737 }
 0x2ef   :  { %v734_v40 = vpop.permute.xlu1 %733 }
 0x33e   :  { %v298_v44 = vpop.f32.mrb[4].mxu0 }
 0x33f   :  { %v864_v45 = vpop.f32.mrb[5].mxu0  ;;  %v355_v46 = vcombine.high %v298_v44, %v1071_v0  ;;  %v362_v51 = vrot.slane %v298_v44, %v1216_v63 }
 0x340   :  { %v301_v47 = vpop.f32.mrb[6].mxu0 }
 0x341   :  { %v865_v48 = vpop.f32.mrb[7].mxu0  ;;  %v421_v49 = vcombine.high %v301_v47, %v1071_v0  ;;  %v369_v55 = vrot.slane %v355_v46, %v1216_v63  ;;  %v428_v56 = vrot.slane %v301_v47, %v1216_v63 }
 0x342   :  { %v348_v50 = vpop.f32.mrb[4].mxu1 }
 0x343   :  { %v370_v52 = vcombine.high %v348_v50, %v1071_v0  ;;  %v377_v53 = vrot.slane %v348_v50, %v1216_v63  ;;  %v870_v54 = vpop.f32.mrb[5].mxu1  ;;  %v435_v1 = vrot.slane %v421_v49, %v1216_v63 }
 0x344   :  { %v351_v57 = vpop.f32.mrb[6].mxu1 }
 0x345   :  { %v384_v58 = vrot.slane %v370_v52, %v1216_v63  ;;  %v385_v59 = vcombine.low %v362_v51, %v377_v53  ;;  %v436_v60 = vcombine.high %v351_v57, %v1071_v0  ;;  %v443_v61 = vrot.slane %v351_v57, %v1216_v63  ;;  %v871_v62 = vpop.f32.mrb[7].mxu1 }
 0x346   :  { %v386_v2 = vcombine.high %v362_v51, %v377_v53 }
 0x347   :  { %v1274_v3 = vrot.slane %v385_v59, %v1220_v8  ;;  %v401_v4 = vcombine.low %v369_v55, %v384_v58  ;;  %v450_v5 = vrot.slane %v436_v60, %v1216_v63  ;;  %v451_v6 = vcombine.low %v428_v56, %v443_v61 }
 0x348   :  { %v400_v7 = vrot.slane %v386_v2, %v1220_v8  ;;  %v452_v9 = vcombine.high %v428_v56, %v443_v61  ;;  %v402_v10 = vcombine.high %v369_v55, %v384_v58 }
 0x349   :  { %v467_v11 = vcombine.low %v435_v1, %v450_v5  ;;  %v417_v12 = vcombine.high %v1274_v3, %v1071_v0  ;;  %v468_v13 = vcombine.high %v435_v1, %v450_v5  ;;  %v1284_v15 = vrot.slane %v401_v4, %v1220_v8 }
 0x34a   :  { %492 = vrot.lane.b32.xlu1 %v400_v7, %s1065_s30  ;;  %v466_v14 = vrot.slane %v452_v9, %v1220_v8  ;;  %v416_v16 = vrot.slane %v402_v10, %v1220_v8  ;;  %v1292_v18 = vrot.slane %v451_v6, %v1220_v8  ;;  %v418_v19 = vcombine.high %v400_v7, %v1071_v0 }
 0x34b   :  { %488 = vrot.lane.b32.xlu0 %v417_v12, %s1079_s20  ;;  %v419_v17 = vcombine.high %v1284_v15, %v1071_v0  ;;  %v475_v22 = vrot.slane %v467_v11, %v1220_v8  ;;  %v482_v25 = vrot.slane %v468_v13, %v1220_v8 }
 0x34c   :  { %v420_v21 = vcombine.high %v416_v16, %v1071_v0  ;;  %v483_v23 = vcombine.high %v1292_v18, %v1071_v0  ;;  %v484_v27 = vcombine.high %v466_v14, %v1071_v0 }
 0x34d   :  { %v485_v24 = vcombine.high %v475_v22, %v1071_v0  ;;  %v486_v26 = vcombine.high %v482_v25, %v1071_v0  ;;  %v774_v0 = vsel %vm208_vm2, %v773_v35, %v718_v32 }
 0x34e   :  { %516 = vrot.lane.b32.xlu1 %v466_v14, %s1065_s30  ;;  %v776_v45 = vsel %vm775_vm4, %v774_v0, %v722_v36 }
 0x34f   :  { %504 = vrot.lane.b32.xlu0 %v416_v16, %s1065_s30  ;;  %v777_v48 = vsel %vm103_vm1, %v776_v45, %v726_v37 }
 0x350   :  { %v779_v51 = vsel %vm778_vm5, %v777_v48, %v730_v38 }
 0x351   :  { %v781_v52 = vsel %vm780_vm6, %v779_v51, %v734_v40 }
 0x352   :  { %500 = vrot.lane.b32.xlu1 %v419_v17, %s1079_s20  ;;  %v783_v54 = vsel %vm782_vm7, %v781_v52, %v738_v41 }
 0x353   :  { %496 = vrot.lane.b32.xlu0 %v418_v19, %s1085_s27 }
 0x356   :  { %508 = vrot.lane.b32.xlu1 %v420_v21, %s1085_s27 }
 0x357   :  { %512 = vrot.lane.b32.xlu0 %v483_v23, %s1079_s20 }
 0x358   :  { %v742_v42 = vpop.permute.xlu1 %741 }
 0x359   :  { %v784_v56 = vsel %vm536_vm8, %v783_v54, %v742_v42 }
 0x35a   :  { %524 = vrot.lane.b32.xlu1 %v485_v24, %s1079_s20  ;;  %v746_v43 = vpop.permute.xlu0 %745 }
 0x35b   :  { %528 = vrot.lane.b32.xlu0 %v482_v25, %s1065_s30  ;;  %s1086_s30 = smov 104   ;;  %v786_v62 = vsel %vm785_vm9, %v784_v56, %v746_v43 }
 0x35c   :  { %v750_v8 = vpop.permute.xlu1 %749 }
 0x35d   :  { %v788_v7 = vsel %vm787_vm11, %v786_v62, %v750_v8 }
 0x35e   :  { %532 = vrot.lane.b32.xlu1 %v486_v26, %s1085_s27  ;;  %v754_v34 = vpop.permute.xlu0 %753 }
 0x35f   :  { %520 = vrot.lane.b32.xlu0 %v484_v27, %s1085_s27 }
 0x362   :  { %757 = vrot.lane.b32.xlu1 %v700_v28, %s1085_s27 }
 0x363   :  { %761 = vrot.lane.b32.xlu0 %v710_v29, %s1086_s30 }
 0x366   :  { %765 = vrot.lane.b32.xlu1 %v707_v30, %s1087_s28 }
 0x367   :  { %769 = vrot.lane.b32.xlu0 %v711_v31, %s1075_s3 }
 0x3bc   :  { %v493_v39 = vpop.permute.xlu1 %492 }
 0x3bd   :  { %v489_v44 = vpop.permute.xlu0 %488 }
 0x3be   :  { %v535_v57 = vsel %vm103_vm1, %v1274_v3, %v489_v44 }
 0x3bf   :  { %v537_v4 = vsel %vm536_vm8, %v535_v57, %v493_v39 }
 0x3c0   :  { %v517_v46 = vpop.permute.xlu1 %516 }
 0x3c1   :  { %v505_v47 = vpop.permute.xlu0 %504 }
 0x3c4   :  { %v501_v49 = vpop.permute.xlu1 %500 }
 0x3c5   :  { %v497_v50 = vpop.permute.xlu0 %496  ;;  %v540_v55 = vsel %vm103_vm1, %v1284_v15, %v501_v49  ;;  %v790_v15 = vsel %vm789_vm12, %v788_v7, %v754_v34 }
 0x3c6   :  { %v541_v59 = vsel %vm536_vm8, %v540_v55, %v505_v47  ;;  %v539_v3 = vsel %vm538_vm10, %v537_v4, %v497_v50 }
 0x3c8   :  { %v509_v53 = vpop.permute.xlu1 %508 }
 0x3c9   :  { %v513_v20 = vpop.permute.xlu0 %512  ;;  %v542_v1 = vsel %vm538_vm10, %v541_v59, %v509_v53 }
 0x3ca   :  { %v543_v2 = vsel %vm103_vm1, %v1292_v18, %v513_v20  ;;  %v553_v9 = vcombine.low %v539_v3, %v542_v1 }
 0x3cb   :  { %v544_v10 = vsel %vm536_vm8, %v543_v2, %v517_v46 }
 0x3cc   :  { %v525_v58 = vpop.permute.xlu1 %524  ;;  %v561_v17 = vrot.slane %v553_v9, %v1216_v63 }
 0x3cd   :  { %v546_v60 = vsel %vm103_vm1, %v475_v22, %v525_v58  ;;  %v529_v61 = vpop.permute.xlu0 %528 }
 0x3ce   :  { %v547_v5 = vsel %vm536_vm8, %v546_v60, %v529_v61 }
 0x3d0   :  { %v533_v6 = vpop.permute.xlu1 %532 }
 0x3d1   :  { %v521_v11 = vpop.permute.xlu0 %520  ;;  %v548_v12 = vsel %vm538_vm10, %v547_v5, %v533_v6 }
 0x3d2   :  { %v545_v13 = vsel %vm538_vm10, %v544_v10, %v521_v11 }
 0x3d3   :  { %v554_v14 = vcombine.low %v545_v13, %v548_v12 }
 0x3d4   :  { %v758_v16 = vpop.permute.xlu1 %757 }
 0x3d5   :  { %v568_v18 = vrot.slane %v554_v14, %v1216_v63  ;;  %v791_v19 = vsel %vm538_vm10, %v790_v15, %v758_v16  ;;  %v762_v21 = vpop.permute.xlu0 %761 }
 0x3d6   :  { %v793_v22 = vsel %vm792_vm13, %v791_v19, %v762_v21 }
 0x3d7   :  { %v569_v23 = vcombine.low %v561_v17, %v568_v18 }
 0x3d8   :  { %v766_v24 = vpop.permute.xlu1 %765 }
 0x3d9   :  { %v795_v25 = vsel %vm794_vm14, %v793_v22, %v766_v24  ;;  %v770_v26 = vpop.permute.xlu0 %769  ;;  %571 = vst [vmem:[#allocation10] sm:$0xff] %v569_v23 }
 0x3da   :  { %v797_v27 = vsel %vm796_vm15, %v795_v25, %v770_v26 }
 0x3db   :  { %1020 = shalt.err (!%p1017_p8)
}
 0x3dc   :  { %s1021_s11 = scalar_lea.hbm %s1368_s4, 128 }
 0x3dd   :  { %p1022_p9 = scmp.ne.s32.totalorder %s1368_s4, %s1021_s11  ;;  %p1025_p10 = scmp.lt.u32.totalorder %s1021_s11, %s1368_s4 }
 0x3df   :  { %p1027_p11 = pnand %p1025_p10, %p1022_p9 }
 0x3e1   :  { %1030 = shalt.err (!%p1027_p11)
}
 0x3e2   :  { %808 = dma.vmem_to_hbm [thread:$0]  %s806_s0, 128, %s1368_s4, [#allocation4]   ;;  %798 = vst [vmem:[#allocation11] sm:$0x3] %v797_v27 }
 0x3e3   :  { %s1031_s16 = scalar_lea.vmem %s816_s7, 32  ;;  %p1036_p13 = scmp.lt.s32.totalorder %s816_s7, %s816_s7 }
 0x3e4   :  { %p1032_p12 = scmp.ne.s32.totalorder %s816_s7, %s1031_s16  ;;  %p1037_p0 = scmp.lt.s32.totalorder %s1031_s16, %s1031_s16 }
 0x3e6   :  { %p1038_p1 = por %p1037_p0, %p1036_p13 }
 0x3e8   :  { %p1039_p2 = pnand %p1038_p1, %p1032_p12 }
 0x3ea   :  { %1042 = shalt.err (!%p1039_p2)
}
 0x3eb   :  { %s1043_s17 = scalar_lea.hbm %s1369_s5, 32 }
 0x3ec   :  { %p1044_p3 = scmp.ne.s32.totalorder %s1369_s5, %s1043_s17  ;;  %p1047_p4 = scmp.lt.u32.totalorder %s1043_s17, %s1369_s5 }
 0x3ee   :  { %p1049_p5 = pnand %p1047_p4, %p1044_p3 }
 0x3f0   :  { %1052 = shalt.err (!%p1049_p5)
}
 0x3f1   :  { %818 = dma.vmem_to_hbm [thread:$0]  %s816_s7, 32, %s1369_s5, [#allocation12]  }
 0x3f2   :  { %1059 = dma.done.wait [#allocation4], 128  }
 0x3f3   :  { %1060 = vsyncadd [#allocation4], 4294967168 }
 0x3f4   :  { %1061 = dma.done.wait [#allocation12], 32  }
 0x3f5   :  { %1062 = vsyncadd [#allocation12], 4294967264 }
 0x3f6   :  { %825 = vsyncpa [#allocation3], 1 }
 0x3f7   :  { %826 = vsyncpa [#allocation6], 1 }
 0x3f8   :  { %827 = vsyncpa [#allocation9], 1 }
 0x3f9   :  { %828 = vsyncpa [#allocation4], 1 }
 0x3fa   :  { %829 = vsyncpa [#allocation12], 1 }

</bundles_post_ra>
